<compile_context>
chip_gen: v5e
topology: v5e:2x2
jax: 0.10.0
libtpu: 0.0.40
codegen_flags: <defaults>
</compile_context>

<pallas_src>
import jax
import jax.numpy as jnp
from jax.experimental import pallas as pl
from jax.experimental.pallas import tpu as pltpu

LANES = 128          # vreg lane width -> last dim of the lane-dense slab
MAX_TILE_ROWS = 4096 # (4096, 128) f32 block = 2 MiB; x4 (in+out, double-buffered) = 8 MiB VMEM
SMALL_N = 65536      # below this, the pallas fixed cost dominates -> pure-jnp fallback


def _round_up(a: int, b: int) -> int:
    return ((a + b - 1) // b) * b


def linreg_kernel(w_ref, b_ref, x_ref, o_ref):
    # scalar broadcast FMA on the VPU: weight * x + bias
    o_ref[...] = w_ref[0] * x_ref[...] + b_ref[0]


def linear_regression_forward(x: jax.Array, weight: jax.Array, bias: jax.Array) -> jax.Array:
    """x: any shape f32; weight, bias: shape (1,) f32 -> same shape/dtype as x."""
    orig_shape = x.shape
    n = int(x.size)

    # Tiny inputs (like the workflow's (8,1) X): let XLA fuse the scalar FMA.
    if n < SMALL_N:
        return (weight * x + bias).astype(x.dtype)

    # ---- lane-dense slab: (rows, 128); pad only to the next lane multiple ----
    rows = -(-n // LANES)                       # ceil(n / 128)
    lane_pad = rows * LANES - n
    flat = x.reshape(-1)
    if lane_pad:
        flat = jnp.pad(flat, (0, lane_pad))     # only taken when n % 128 != 0
    slab = flat.reshape(rows, LANES)

    # Min sublane multiple for the tile's second-to-last dim (module contract is
    # f32 -> 8; guard anyway in case of narrower dtypes).
    sub = {4: 8, 2: 16, 1: 32}.get(jnp.dtype(x.dtype).itemsize, 8)

    # Big blocks to amortize per-step overhead, but keep the grid >= 2 so the
    # "parallel" axis has something to shard across v7x's two TensorCores.
    tile_rows = min(MAX_TILE_ROWS, _round_up(-(-rows // 2), sub))
    tile_rows = max(tile_rows, sub)
    grid = (pl.cdiv(rows, tile_rows),)          # ragged last block is masked by Pallas

    out_slab = pl.pallas_call(
        linreg_kernel,
        out_shape=jax.ShapeDtypeStruct((rows, LANES), x.dtype),
        grid=grid,
        in_specs=[
            pl.BlockSpec(memory_space=pltpu.SMEM),                   # weight (1,)
            pl.BlockSpec(memory_space=pltpu.SMEM),                   # bias   (1,)
            pl.BlockSpec((tile_rows, LANES), lambda i: (i, 0)),      # x tile in VMEM
        ],
        out_specs=pl.BlockSpec((tile_rows, LANES), lambda i: (i, 0)),
        compiler_params=pltpu.CompilerParams(
            dimension_semantics=("parallel",),   # shard rows across v7x's 2 TCs; no-op on v5e/v6e
        ),
    )(weight, bias, slab)

    if lane_pad:
        return out_slab.reshape(-1)[:n].reshape(orig_shape)
    return out_slab.reshape(orig_shape)          # fast path: no pad, no slice


if __name__ == "__main__":
    key = jax.random.PRNGKey(0)
    k_w, k_b, k1, k2, k3 = jax.random.split(key, 5)

    # Deterministic "randn"-style parameter init (shapes from __init__: (1,), (1,))
    weight = jax.random.normal(k_w, (1,), dtype=jnp.float32)
    bias = jax.random.normal(k_b, (1,), dtype=jnp.float32)

    # Case 1: tiny column vector, same layout as the PyTorch workflow's X -> jnp fallback.
    x_small = jax.random.normal(k1, (8, 1), dtype=jnp.float32)
    out_small = jax.block_until_ready(linear_regression_forward(x_small, weight, bias))
    ref_small = weight * x_small + bias
    assert out_small.shape == x_small.shape and out_small.dtype == x_small.dtype
    assert jnp.allclose(out_small, ref_small, atol=1e-6, rtol=1e-6)

    # Case 2: large lane-aligned input -> pallas fast path (no pad, no slice, grid of 2).
    x_big = jax.random.normal(k2, (131072, 1), dtype=jnp.float32)
    out_big = jax.block_until_ready(linear_regression_forward(x_big, weight, bias))
    ref_big = weight * x_big + bias
    assert out_big.shape == x_big.shape and out_big.dtype == x_big.dtype
    assert jnp.allclose(out_big, ref_big, atol=1e-6, rtol=1e-6)

    # Case 3: large non-128-multiple input -> pallas path with lane pad + ragged last block.
    x_rag = jax.random.normal(k3, (100000,), dtype=jnp.float32)
    out_rag = jax.block_until_ready(linear_regression_forward(x_rag, weight, bias))
    ref_rag = weight * x_rag + bias
    assert out_rag.shape == x_rag.shape and out_rag.dtype == x_rag.dtype
    assert jnp.allclose(out_rag, ref_rag, atol=1e-6, rtol=1e-6)

    print("KERNEL_OK")
</pallas_src>

<mosaic_0001>
module attributes {stable_mosaic.version = 11 : i64} {
  func.func @linreg_kernel(%arg0: i32, %arg1: memref<1xf32, #tpu.memory_space<smem>>, %arg2: memref<1xf32, #tpu.memory_space<smem>>, %arg3: memref<512x128xf32, #tpu.memory_space<vmem>>, %arg4: memref<512x128xf32, #tpu.memory_space<vmem>>) attributes {dimension_semantics = [#tpu.dimension_semantics<parallel>], iteration_bounds = array<i64: 2>, scalar_prefetch = 0 : i64, scratch_operands = 0 : i64, tpu.core_type = #tpu.core_type<tc>, window_params = [{transform_indices = @transform_0, window_bounds = array<i64: 1>}, {transform_indices = @transform_1, window_bounds = array<i64: 1>}, {transform_indices = @transform_2, window_bounds = array<i64: 512, 128>}, {transform_indices = @transform_3, window_bounds = array<i64: 512, 128>}]} {
    %c0 = arith.constant 0 : index
    %0 = memref.load %arg1[%c0] : memref<1xf32, #tpu.memory_space<smem>>
    %c0_0 = arith.constant 0 : index
    %c0_1 = arith.constant 0 : index
    %1 = vector.load %arg3[%c0_0, %c0_1] : memref<512x128xf32, #tpu.memory_space<vmem>>, vector<512x128xf32>
    %2 = vector.broadcast %0 : f32 to vector<512x128xf32>
    %3 = arith.mulf %2, %1 : vector<512x128xf32>
    %c0_2 = arith.constant 0 : index
    %4 = memref.load %arg2[%c0_2] : memref<1xf32, #tpu.memory_space<smem>>
    %5 = vector.broadcast %4 : f32 to vector<512x128xf32>
    %6 = arith.addf %3, %5 : vector<512x128xf32>
    %c0_3 = arith.constant 0 : index
    %c0_4 = arith.constant 0 : index
    %7 = vector.load %arg4[%c0_3, %c0_4] : memref<512x128xf32, #tpu.memory_space<vmem>>, vector<512x128xf32>
    tpu.vector_store %arg4[%c0_3, %c0_4], %6 {strides = array<i32>} : memref<512x128xf32, #tpu.memory_space<vmem>>, vector<512x128xf32>,
    return
  }
  func.func @transform_0(%arg0: i32) -> i32 {
    %c0_i32 = arith.constant 0 : i32
    %c0_i32_0 = arith.constant 0 : i32
    return %c0_i32 : i32
  }
  func.func @transform_1(%arg0: i32) -> i32 {
    %c0_i32 = arith.constant 0 : i32
    %c0_i32_0 = arith.constant 0 : i32
    return %c0_i32 : i32
  }
  func.func @transform_2(%arg0: i32) -> (i32, i32) {
    %c0_i32 = arith.constant 0 : i32
    %c0_i32_0 = arith.constant 0 : i32
    return %arg0, %c0_i32 : i32, i32
  }
  func.func @transform_3(%arg0: i32) -> (i32, i32) {
    %c0_i32 = arith.constant 0 : i32
    %c0_i32_0 = arith.constant 0 : i32
    return %arg0, %c0_i32 : i32, i32
  }
}

</mosaic_0001>

<bundles_post_ra>
// kernel: tpu_custom_call.1
= control target key start
LH: loop header
LB: loop body
LE: loop exit
PB: predicated region body
PF: predicated region fallthrough
CT: control target
= control target key end

     0   :  { %s1134_s0 = inlined_call_operand.<no memory space> [shape: f32[1], index: 0, kind: input, shape index: {}]   ;;  %s1135_s1 = inlined_call_operand.<no memory space> [shape: f32[1], index: 1, kind: input, shape index: {}]   ;;  %s1136_s2 = inlined_call_operand.hbm [shape: f32[1024,128], index: 2, kind: input, shape index: {}]   ;;  %s1137_s3 = inlined_call_operand.hbm [shape: f32[1024,128], index: 3, kind: output, shape index: {}]  }
   0x1   :  { %8 = sst [smem:[#allocation2]] %s1134_s0 }
   0x2   :  { %9 = sst [smem:[#allocation3]] %s1135_s1 }
   0x3   :  { %10 = vsyncpa [#allocation5], 0 }
   0x4   :  { %12 = vsyncpa [#allocation5 + $0x1], 0 }
   0x5   :  { %13 = vsyncpa [#allocation6], 0 }
   0x6   :  { %15 = vsyncpa [#allocation6 + $0x1], 0  ;;  %s738_s16 = smov 0   ;;  %s740_s17 = smov 0  }
   0x7   :  { %s742_s18 = smov 0   ;;  %s744_s19 = smov 0  }
   0x8 LB: > { %s759_s0 = sadd.s32 4294967295, %s706_s19   ;;  %s544_s1 = sadd.s32 4294967294, %s706_s19   ;;  %s706_s19 = sphi %s744_s19, %s1147_s19   ;;  %s702_s18 = sphi %s742_s18, %s1146_s18   ;;  %s698_s17 = sphi %s740_s17, %s1145_s17   ;;  %s694_s16 = sphi %s738_s16, %s1144_s16  }
   0x9   : > { %s763_s20 = sadd.s32 1, %s706_s19   ;;  %s70_s21 = sadd.s32 1, %s702_s18 }
   0xa   : > { %s67_s22 = ssub.s32 %s706_s19, %s763_s20  ;;  %p77_p0 = scmp.ne.s32.totalorder %s702_s18, %s698_s17 }
   0xb   : > { %p68_p1 = scmp.eq.s32.totalorder %s67_s22, 0  ;;  %p78_p2 = scmp.eq.s32.totalorder %s706_s19, 0 }
   0xc   : > { %p83_p3 = scmp.ne.s32.totalorder %s698_s17, %s694_s16  ;;  %p84_p4 = scmp.eq.s32.totalorder %s759_s0, 0 }
   0xd   : > { %s775_s23 = scalar_select %p68_p1, %s702_s18, %s70_s21  }
   0xe   : > { %p777_p5 = por %p78_p2, %p77_p0  ;;  %p781_p6 = por %p84_p4, %p83_p3 }
   0xf   : > { %p107_p7 = scmp.eq.s32.totalorder %s759_s0, 1  ;;  %p113_p8 = scmp.eq.s32.totalorder %s544_s1, 1 }
  0x10   : > { %p572_p10 = scmp.lt.s32.totalorder %s706_s19, 2  ;;  %s139_s28 = sand.u32 1, %s702_s18  }
  0x11   : > { %p788_p11 = por %p107_p7, %p77_p0  ;;  %p792_p12 = por %p113_p8, %p83_p3 }
  0x12   : > { %s558_s29 = sshll.u32 %s706_s19, 9  ;;  %s547_s30 = sshll.u32 %s139_s28, 9 }
  0x13   : > { %s148_s6 = scalar_lea.hbm %s1136_s2, %s558_s29  ;;  %s143_s8 = scalar_lea.vmem [#allocation4], %s547_s30 }
  0x14   : > { %s149_s7 = sshll.u32 %s148_s6, 4  ;;  %s151_s9 = sshll.u32 %s143_s8, 4  ;;  %s150_s7 = int_to_ptr.hbm [resolvable:$true] %s149_s7  ;;  %s152_s9 = int_to_ptr.vmem [resolvable:$true] %s151_s9 }
  0x15   : > { %p803_p13 = pnand %p572_p10, %p777_p5  ;;  %p550_p0 = scmp.ge.s32.totalorder %s706_s19, 1 }
  0x16   : > { %p159_p1 = scmp.lt.s32.totalorder %s706_s19, 3  ;;  %s140_s11 = scalar_lea.sflag [#allocation5], %s139_s28 }
  0x17   : > { %s610_s12 = sshra.s32 %s150_s7, 4  ;;  %p614_p3 = pneg %p803_p13  ;;  %s611_s12 = int_to_ptr.hbm [resolvable:$true] %s610_s12 }
  0x18   : > { %s612_s13 = scalar_lea.hbm %s611_s12, 512  ;;  %s617_s1 = scalar_lea.hbm %s1136_s2, 1024 }
  0x19   : > { %p613_p2 = scmp.ne.s32.totalorder %s611_s12, %s612_s13  ;;  %p618_p5 = scmp.lt.s32.totalorder %s611_s12, %s1136_s2 }
  0x1a   : > { %p619_p8 = scmp.lt.s32.totalorder %s617_s1, %s612_s13 }
  0x1b   : > { %p615_p4 = pnand %p614_p3, %p613_p2 }
  0x1c   : > { %p620_p10 = por %p619_p8, %p618_p5 }
  0x1d   : > { %p616_p7 = pneg %p615_p4 }
  0x1f   : > { %p621_p9 = pnand %p620_p10, %p616_p7 }
  0x21   : > { %624 = shalt.err (!%p621_p9)
}
  0x22   : > { %s708_s24 = smov 128   ;;  %s709_s28 = smov 8  }
  0x23   : > { %567 = dma.hbm_to_vmem [thread:$0]  (!%p803_p13), %s150_s7, 8192, %s152_s9, %s140_s11, %s708_s24, %s708_s24, %s709_s28  }
  0x24   : > { %p160_p2 = pnand %p550_p0, %p159_p1 }
  0x25   : > { %s824_s29 = sand.u32 (!%p160_p2), 1, %s698_s17  }
  0x26   : > { %163 = sbr.rel (%p160_p2) target bundleno = 122 (0x7a), region = 32  ;;  %s551_s30 = sshll.u32 (!%p160_p2), %s824_s29, 9 }
  0x27   : > { %s166_s4 = scalar_lea.sflag (!%p160_p2), [#allocation5], %s824_s29  ;;  %s830_s5 = scalar_lea.vmem (!%p160_p2), [#allocation4], %s551_s30 }
  0x2b   : > { %685 = dma.done.wait (%p781_p6), %s166_s4, 8192  }
  0x2c   : > { %687 = vsyncadd (%p781_p6), %s166_s4, 4294959104  ;;  %s195_s6 = sld [smem:[#allocation2]]  ;;  %v196_v0 = vld [vmem:[%s830_s5] sm:$0xff]  ;;  %v197_v2 = vld [vmem:[%s830_s5 + $0x8] sm:$0xff]  ;;  %s865_s25 = scalar_lea.vmem [#allocation7], %s551_s30 }
  0x2d   : > { %s325_s7 = sld [smem:[#allocation3]]  ;;  %v198_v3 = vld [vmem:[%s830_s5 + $0x10] sm:$0xff]  ;;  %v199_v8 = vld [vmem:[%s830_s5 + $0x18] sm:$0xff]  ;;  %v200_v9 = vld [vmem:[%s830_s5 + $0x20] sm:$0xff]  ;;  %s559_s8 = sshll.u32 %s759_s0, 9 }
  0x2e   : > { %v201_v10 = vld [vmem:[%s830_s5 + $0x28] sm:$0xff]  ;;  %v202_v14 = vld [vmem:[%s830_s5 + $0x30] sm:$0xff]  ;;  %v203_v15 = vld [vmem:[%s830_s5 + $0x38] sm:$0xff]  ;;  %s467_s10 = scalar_lea.hbm %s1137_s3, %s559_s8  ;;  %s468_s11 = sshll.u32 %s865_s25, 4  ;;  %s469_s11 = int_to_ptr.vmem [resolvable:$true] %s468_s11 }
  0x2f   : > { %v204_v16 = vld [vmem:[%s830_s5 + $0x40] sm:$0xff]  ;;  %v205_v21 = vld [vmem:[%s830_s5 + $0x48] sm:$0xff]  ;;  %v206_v24 = vld [vmem:[%s830_s5 + $0x50] sm:$0xff]  ;;  %s470_s12 = sshll.u32 %s467_s10, 4  ;;  %s456_s13 = scalar_lea.sflag [#allocation6], %s824_s29  ;;  %s471_s12 = int_to_ptr.hbm [resolvable:$true] %s470_s12 }
  0x30   : > { %v207_v27 = vld [vmem:[%s830_s5 + $0x58] sm:$0xff]  ;;  %v208_v30 = vld [vmem:[%s830_s5 + $0x60] sm:$0xff]  ;;  %v209_v33 = vld [vmem:[%s830_s5 + $0x68] sm:$0xff]  ;;  %s654_s14 = sshra.s32 %s471_s12, 4  ;;  %s660_s22 = scalar_lea.hbm %s1137_s3, 1024  ;;  %s655_s14 = int_to_ptr.hbm [resolvable:$true] %s654_s14 }
  0x31   : > { %v210_v36 = vld [vmem:[%s830_s5 + $0x70] sm:$0xff]  ;;  %v211_v39 = vld [vmem:[%s830_s5 + $0x78] sm:$0xff]  ;;  %v212_v42 = vld [vmem:[%s830_s5 + $0x80] sm:$0xff]  ;;  %s656_s15 = scalar_lea.hbm %s655_s14, 512  ;;  %p661_p0 = scmp.lt.s32.totalorder %s655_s14, %s1137_s3 }
  0x32   : > { %v837_v1 = vstv %s195_s6  ;;  %v213_v45 = vld [vmem:[%s830_s5 + $0x88] sm:$0xff]  ;;  %v214_v48 = vld [vmem:[%s830_s5 + $0x90] sm:$0xff]  ;;  %v215_v51 = vld [vmem:[%s830_s5 + $0x98] sm:$0xff]  ;;  %p657_p6 = scmp.ne.s32.totalorder %s655_s14, %s656_s15  ;;  %p662_p1 = scmp.lt.s32.totalorder %s660_s22, %s656_s15 }
  0x33   : > { %v261_v4 = vmul.f32 %v837_v1, %v196_v0  ;;  %v842_v5 = vstv %s325_s7  ;;  %v262_v6 = vmul.f32 %v837_v1, %v197_v2  ;;  %v263_v7 = vmul.f32 %v837_v1, %v198_v3  ;;  %v216_v54 = vld [vmem:[%s830_s5 + $0xa0] sm:$0xff]  ;;  %v217_v57 = vld [vmem:[%s830_s5 + $0xa8] sm:$0xff]  ;;  %v218_v60 = vld [vmem:[%s830_s5 + $0xb0] sm:$0xff] }
  0x34   : > { %v264_v11 = vmul.f32 %v837_v1, %v199_v8  ;;  %v265_v12 = vmul.f32 %v837_v1, %v200_v9  ;;  %v266_v13 = vmul.f32 %v837_v1, %v201_v10  ;;  %v267_v20 = vmul.f32 %v837_v1, %v202_v14  ;;  %v219_v63 = vld [vmem:[%s830_s5 + $0xb8] sm:$0xff]  ;;  %v220_v3 = vld [vmem:[%s830_s5 + $0xc0] sm:$0xff]  ;;  %v222_v10 = vld [vmem:[%s830_s5 + $0xd0] sm:$0xff]  ;;  %p658_p9 = pnand %p657_p6, %p788_p11  ;;  %p663_p3 = por %p662_p1, %p661_p0 }
  0x35   : > { %v327_v17 = vadd.f32 %v842_v5, %v261_v4  ;;  %v328_v18 = vadd.f32 %v842_v5, %v262_v6  ;;  %v329_v19 = vadd.f32 %v842_v5, %v263_v7  ;;  %v268_v23 = vmul.f32 %v837_v1, %v203_v15  ;;  %v221_v7 = vld [vmem:[%s830_s5 + $0xc8] sm:$0xff] }
  0x36   : > { %v330_v22 = vadd.f32 %v842_v5, %v264_v11  ;;  %v331_v25 = vadd.f32 %v842_v5, %v265_v12  ;;  %v269_v26 = vmul.f32 %v837_v1, %v204_v16  ;;  %v332_v28 = vadd.f32 %v842_v5, %v266_v13  ;;  %v223_v13 = vld [vmem:[%s830_s5 + $0xd8] sm:$0xff]  ;;  %v224_v16 = vld [vmem:[%s830_s5 + $0xe0] sm:$0xff]  ;;  %p659_p13 = pneg %p658_p9 }
  0x37   : > { %391 = vst [vmem:[%s865_s25] sm:$0xff] %v327_v17  ;;  %v270_v29 = vmul.f32 %v837_v1, %v205_v21  ;;  %v333_v31 = vadd.f32 %v842_v5, %v267_v20  ;;  %v271_v32 = vmul.f32 %v837_v1, %v206_v24  ;;  %v334_v34 = vadd.f32 %v842_v5, %v268_v23 }
  0x38   : > { %392 = vst [vmem:[%s865_s25 + $0x8] sm:$0xff] %v328_v18  ;;  %v272_v35 = vmul.f32 %v837_v1, %v207_v27  ;;  %v335_v37 = vadd.f32 %v842_v5, %v269_v26  ;;  %v273_v38 = vmul.f32 %v837_v1, %v208_v30  ;;  %v274_v41 = vmul.f32 %v837_v1, %v209_v33  ;;  %p664_p4 = pnand %p663_p3, %p659_p13 }
  0x39   : > { %393 = vst [vmem:[%s865_s25 + $0x10] sm:$0xff] %v329_v19  ;;  %v336_v40 = vadd.f32 %v842_v5, %v270_v29  ;;  %v337_v43 = vadd.f32 %v842_v5, %v271_v32  ;;  %v275_v44 = vmul.f32 %v837_v1, %v210_v36  ;;  %v276_v47 = vmul.f32 %v837_v1, %v211_v39  ;;  %v225_v19 = vld [vmem:[%s830_s5 + $0xe8] sm:$0xff] }
  0x3a   : > { %394 = vst [vmem:[%s865_s25 + $0x18] sm:$0xff] %v330_v22  ;;  %v338_v46 = vadd.f32 %v842_v5, %v272_v35  ;;  %v339_v49 = vadd.f32 %v842_v5, %v273_v38  ;;  %v277_v50 = vmul.f32 %v837_v1, %v212_v42  ;;  %v340_v52 = vadd.f32 %v842_v5, %v274_v41  ;;  %v226_v22 = vld [vmem:[%s830_s5 + $0xf0] sm:$0xff] }
  0x3b   : > { %395 = vst [vmem:[%s865_s25 + $0x20] sm:$0xff] %v331_v25  ;;  %v278_v53 = vmul.f32 %v837_v1, %v213_v45  ;;  %v341_v55 = vadd.f32 %v842_v5, %v275_v44  ;;  %v279_v56 = vmul.f32 %v837_v1, %v214_v48  ;;  %v342_v58 = vadd.f32 %v842_v5, %v276_v47  ;;  %v227_v25 = vld [vmem:[%s830_s5 + $0xf8] sm:$0xff] }
  0x3c   : > { %396 = vst [vmem:[%s865_s25 + $0x28] sm:$0xff] %v332_v28  ;;  %v280_v59 = vmul.f32 %v837_v1, %v215_v51  ;;  %v343_v61 = vadd.f32 %v842_v5, %v277_v50  ;;  %v281_v62 = vmul.f32 %v837_v1, %v216_v54  ;;  %v282_v2 = vmul.f32 %v837_v1, %v217_v57  ;;  %v228_v28 = vld [vmem:[%s830_s5 + $0x100] sm:$0xff] }
  0x3d   : > { %397 = vst [vmem:[%s865_s25 + $0x30] sm:$0xff] %v333_v31  ;;  %v344_v0 = vadd.f32 %v842_v5, %v278_v53  ;;  %v345_v4 = vadd.f32 %v842_v5, %v279_v56  ;;  %v283_v6 = vmul.f32 %v837_v1, %v218_v60  ;;  %v284_v9 = vmul.f32 %v837_v1, %v219_v63  ;;  %v229_v31 = vld [vmem:[%s830_s5 + $0x108] sm:$0xff] }
  0x3e   : > { %398 = vst [vmem:[%s865_s25 + $0x38] sm:$0xff] %v334_v34  ;;  %v346_v8 = vadd.f32 %v842_v5, %v280_v59  ;;  %v347_v11 = vadd.f32 %v842_v5, %v281_v62  ;;  %v285_v12 = vmul.f32 %v837_v1, %v220_v3  ;;  %v348_v14 = vadd.f32 %v842_v5, %v282_v2  ;;  %v230_v34 = vld [vmem:[%s830_s5 + $0x110] sm:$0xff] }
  0x3f   : > { %399 = vst [vmem:[%s865_s25 + $0x40] sm:$0xff] %v335_v37  ;;  %v286_v15 = vmul.f32 %v837_v1, %v221_v7  ;;  %v349_v17 = vadd.f32 %v842_v5, %v283_v6  ;;  %v287_v18 = vmul.f32 %v837_v1, %v222_v10  ;;  %v350_v20 = vadd.f32 %v842_v5, %v284_v9  ;;  %v231_v37 = vld [vmem:[%s830_s5 + $0x118] sm:$0xff] }
  0x40   : > { %400 = vst [vmem:[%s865_s25 + $0x48] sm:$0xff] %v336_v40  ;;  %v288_v21 = vmul.f32 %v837_v1, %v223_v13  ;;  %v351_v23 = vadd.f32 %v842_v5, %v285_v12  ;;  %v289_v24 = vmul.f32 %v837_v1, %v224_v16  ;;  %v290_v27 = vmul.f32 %v837_v1, %v225_v19  ;;  %v232_v40 = vld [vmem:[%s830_s5 + $0x120] sm:$0xff] }
  0x41   : > { %401 = vst [vmem:[%s865_s25 + $0x50] sm:$0xff] %v337_v43  ;;  %v352_v26 = vadd.f32 %v842_v5, %v286_v15  ;;  %v353_v29 = vadd.f32 %v842_v5, %v287_v18  ;;  %v291_v30 = vmul.f32 %v837_v1, %v226_v22  ;;  %v292_v33 = vmul.f32 %v837_v1, %v227_v25  ;;  %v233_v43 = vld [vmem:[%s830_s5 + $0x128] sm:$0xff] }
  0x42   : > { %402 = vst [vmem:[%s865_s25 + $0x58] sm:$0xff] %v338_v46  ;;  %v354_v32 = vadd.f32 %v842_v5, %v288_v21  ;;  %v355_v35 = vadd.f32 %v842_v5, %v289_v24  ;;  %v293_v36 = vmul.f32 %v837_v1, %v228_v28  ;;  %v356_v38 = vadd.f32 %v842_v5, %v290_v27  ;;  %v234_v46 = vld [vmem:[%s830_s5 + $0x130] sm:$0xff] }
  0x43   : > { %403 = vst [vmem:[%s865_s25 + $0x60] sm:$0xff] %v339_v49  ;;  %v294_v39 = vmul.f32 %v837_v1, %v229_v31  ;;  %v357_v41 = vadd.f32 %v842_v5, %v291_v30  ;;  %v295_v42 = vmul.f32 %v837_v1, %v230_v34  ;;  %v358_v44 = vadd.f32 %v842_v5, %v292_v33  ;;  %v235_v49 = vld [vmem:[%s830_s5 + $0x138] sm:$0xff] }
  0x44   : > { %404 = vst [vmem:[%s865_s25 + $0x68] sm:$0xff] %v340_v52  ;;  %v296_v45 = vmul.f32 %v837_v1, %v231_v37  ;;  %v359_v47 = vadd.f32 %v842_v5, %v293_v36  ;;  %v297_v48 = vmul.f32 %v837_v1, %v232_v40  ;;  %v298_v51 = vmul.f32 %v837_v1, %v233_v43  ;;  %v236_v52 = vld [vmem:[%s830_s5 + $0x140] sm:$0xff] }
  0x45   : > { %405 = vst [vmem:[%s865_s25 + $0x70] sm:$0xff] %v341_v55  ;;  %v360_v50 = vadd.f32 %v842_v5, %v294_v39  ;;  %v361_v53 = vadd.f32 %v842_v5, %v295_v42  ;;  %v299_v54 = vmul.f32 %v837_v1, %v234_v46  ;;  %v237_v55 = vld [vmem:[%s830_s5 + $0x148] sm:$0xff]  ;;  %v300_v57 = vmul.f32 %v837_v1, %v235_v49 }
  0x46   : > { %406 = vst [vmem:[%s865_s25 + $0x78] sm:$0xff] %v342_v58  ;;  %v362_v56 = vadd.f32 %v842_v5, %v296_v45  ;;  %v238_v58 = vld [vmem:[%s830_s5 + $0x150] sm:$0xff]  ;;  %v363_v59 = vadd.f32 %v842_v5, %v297_v48  ;;  %v301_v60 = vmul.f32 %v837_v1, %v236_v52  ;;  %v364_v62 = vadd.f32 %v842_v5, %v298_v51 }
  0x47   : > { %407 = vst [vmem:[%s865_s25 + $0x80] sm:$0xff] %v343_v61  ;;  %v239_v61 = vld [vmem:[%s830_s5 + $0x158] sm:$0xff]  ;;  %v302_v63 = vmul.f32 %v837_v1, %v237_v55  ;;  %v365_v2 = vadd.f32 %v842_v5, %v299_v54  ;;  %v303_v3 = vmul.f32 %v837_v1, %v238_v58  ;;  %v366_v6 = vadd.f32 %v842_v5, %v300_v57 }
  0x48   : > { %408 = vst [vmem:[%s865_s25 + $0x88] sm:$0xff] %v344_v0  ;;  %v240_v0 = vld [vmem:[%s830_s5 + $0x160] sm:$0xff]  ;;  %v304_v7 = vmul.f32 %v837_v1, %v239_v61  ;;  %v367_v9 = vadd.f32 %v842_v5, %v301_v60 }
  0x49   : > { %409 = vst [vmem:[%s865_s25 + $0x90] sm:$0xff] %v345_v4  ;;  %v241_v4 = vld [vmem:[%s830_s5 + $0x168] sm:$0xff]  ;;  %v305_v10 = vmul.f32 %v837_v1, %v240_v0  ;;  %v368_v12 = vadd.f32 %v842_v5, %v302_v63  ;;  %v369_v15 = vadd.f32 %v842_v5, %v303_v3 }
  0x4a   : > { %410 = vst [vmem:[%s865_s25 + $0x98] sm:$0xff] %v346_v8  ;;  %v242_v8 = vld [vmem:[%s830_s5 + $0x170] sm:$0xff]  ;;  %v306_v13 = vmul.f32 %v837_v1, %v241_v4  ;;  %v370_v18 = vadd.f32 %v842_v5, %v304_v7 }
  0x4b   : > { %411 = vst [vmem:[%s865_s25 + $0xa0] sm:$0xff] %v347_v11  ;;  %v243_v11 = vld [vmem:[%s830_s5 + $0x178] sm:$0xff]  ;;  %v307_v16 = vmul.f32 %v837_v1, %v242_v8  ;;  %v371_v21 = vadd.f32 %v842_v5, %v305_v10 }
  0x4c   : > { %412 = vst [vmem:[%s865_s25 + $0xa8] sm:$0xff] %v348_v14  ;;  %v244_v14 = vld [vmem:[%s830_s5 + $0x180] sm:$0xff]  ;;  %v308_v19 = vmul.f32 %v837_v1, %v243_v11  ;;  %v372_v24 = vadd.f32 %v842_v5, %v306_v13 }
  0x4d   : > { %413 = vst [vmem:[%s865_s25 + $0xb0] sm:$0xff] %v349_v17  ;;  %v245_v17 = vld [vmem:[%s830_s5 + $0x188] sm:$0xff]  ;;  %v309_v22 = vmul.f32 %v837_v1, %v244_v14  ;;  %v373_v27 = vadd.f32 %v842_v5, %v307_v16 }
  0x4e   : > { %414 = vst [vmem:[%s865_s25 + $0xb8] sm:$0xff] %v350_v20  ;;  %v246_v20 = vld [vmem:[%s830_s5 + $0x190] sm:$0xff]  ;;  %v310_v25 = vmul.f32 %v837_v1, %v245_v17  ;;  %v374_v30 = vadd.f32 %v842_v5, %v308_v19 }
  0x4f   : > { %415 = vst [vmem:[%s865_s25 + $0xc0] sm:$0xff] %v351_v23  ;;  %v247_v23 = vld [vmem:[%s830_s5 + $0x198] sm:$0xff]  ;;  %v311_v28 = vmul.f32 %v837_v1, %v246_v20  ;;  %v375_v33 = vadd.f32 %v842_v5, %v309_v22 }
  0x50   : > { %416 = vst [vmem:[%s865_s25 + $0xc8] sm:$0xff] %v352_v26  ;;  %v248_v26 = vld [vmem:[%s830_s5 + $0x1a0] sm:$0xff]  ;;  %v312_v31 = vmul.f32 %v837_v1, %v247_v23  ;;  %v376_v36 = vadd.f32 %v842_v5, %v310_v25 }
  0x51   : > { %417 = vst [vmem:[%s865_s25 + $0xd0] sm:$0xff] %v353_v29  ;;  %v249_v29 = vld [vmem:[%s830_s5 + $0x1a8] sm:$0xff]  ;;  %v313_v34 = vmul.f32 %v837_v1, %v248_v26  ;;  %v377_v39 = vadd.f32 %v842_v5, %v311_v28 }
  0x52   : > { %418 = vst [vmem:[%s865_s25 + $0xd8] sm:$0xff] %v354_v32  ;;  %v250_v32 = vld [vmem:[%s830_s5 + $0x1b0] sm:$0xff]  ;;  %v314_v37 = vmul.f32 %v837_v1, %v249_v29  ;;  %v378_v42 = vadd.f32 %v842_v5, %v312_v31 }
  0x53   : > { %419 = vst [vmem:[%s865_s25 + $0xe0] sm:$0xff] %v355_v35  ;;  %v251_v35 = vld [vmem:[%s830_s5 + $0x1b8] sm:$0xff]  ;;  %v315_v40 = vmul.f32 %v837_v1, %v250_v32  ;;  %v379_v45 = vadd.f32 %v842_v5, %v313_v34 }
  0x54   : > { %420 = vst [vmem:[%s865_s25 + $0xe8] sm:$0xff] %v356_v38  ;;  %v252_v38 = vld [vmem:[%s830_s5 + $0x1c0] sm:$0xff]  ;;  %v316_v43 = vmul.f32 %v837_v1, %v251_v35  ;;  %v380_v48 = vadd.f32 %v842_v5, %v314_v37 }
  0x55   : > { %421 = vst [vmem:[%s865_s25 + $0xf0] sm:$0xff] %v357_v41  ;;  %v253_v41 = vld [vmem:[%s830_s5 + $0x1c8] sm:$0xff]  ;;  %v317_v46 = vmul.f32 %v837_v1, %v252_v38  ;;  %v381_v51 = vadd.f32 %v842_v5, %v315_v40 }
  0x56   : > { %422 = vst [vmem:[%s865_s25 + $0xf8] sm:$0xff] %v358_v44  ;;  %v254_v44 = vld [vmem:[%s830_s5 + $0x1d0] sm:$0xff]  ;;  %v318_v49 = vmul.f32 %v837_v1, %v253_v41  ;;  %v382_v54 = vadd.f32 %v842_v5, %v316_v43 }
  0x57   : > { %423 = vst [vmem:[%s865_s25 + $0x100] sm:$0xff] %v359_v47  ;;  %v255_v47 = vld [vmem:[%s830_s5 + $0x1d8] sm:$0xff]  ;;  %v319_v52 = vmul.f32 %v837_v1, %v254_v44  ;;  %v383_v57 = vadd.f32 %v842_v5, %v317_v46 }
  0x58   : > { %424 = vst [vmem:[%s865_s25 + $0x108] sm:$0xff] %v360_v50  ;;  %v256_v50 = vld [vmem:[%s830_s5 + $0x1e0] sm:$0xff]  ;;  %v320_v55 = vmul.f32 %v837_v1, %v255_v47  ;;  %v384_v60 = vadd.f32 %v842_v5, %v318_v49 }
  0x59   : > { %425 = vst [vmem:[%s865_s25 + $0x110] sm:$0xff] %v361_v53  ;;  %v257_v53 = vld [vmem:[%s830_s5 + $0x1e8] sm:$0xff]  ;;  %v321_v58 = vmul.f32 %v837_v1, %v256_v50 }
  0x5a   : > { %426 = vst [vmem:[%s865_s25 + $0x118] sm:$0xff] %v362_v56  ;;  %v258_v56 = vld [vmem:[%s830_s5 + $0x1f0] sm:$0xff]  ;;  %v322_v61 = vmul.f32 %v837_v1, %v257_v53  ;;  %v386_v0 = vadd.f32 %v842_v5, %v320_v55 }
  0x5b   : > { %427 = vst [vmem:[%s865_s25 + $0x120] sm:$0xff] %v363_v59  ;;  %v259_v59 = vld [vmem:[%s830_s5 + $0x1f8] sm:$0xff]  ;;  %v323_v63 = vmul.f32 %v837_v1, %v258_v56  ;;  %v387_v3 = vadd.f32 %v842_v5, %v321_v58 }
  0x5c   : > { %428 = vst [vmem:[%s865_s25 + $0x128] sm:$0xff] %v364_v62  ;;  %v385_v62 = vadd.f32 %v842_v5, %v319_v52  ;;  %v388_v4 = vadd.f32 %v842_v5, %v322_v61 }
  0x5d   : > { %429 = vst [vmem:[%s865_s25 + $0x130] sm:$0xff] %v365_v2  ;;  %v324_v2 = vmul.f32 %v837_v1, %v259_v59 }
  0x5e   : > { %430 = vst [vmem:[%s865_s25 + $0x138] sm:$0xff] %v366_v6  ;;  %v389_v6 = vadd.f32 %v842_v5, %v323_v63 }
  0x5f   : > { %431 = vst [vmem:[%s865_s25 + $0x140] sm:$0xff] %v367_v9  ;;  %v390_v7 = vadd.f32 %v842_v5, %v324_v2 }
  0x60   : > { %432 = vst [vmem:[%s865_s25 + $0x148] sm:$0xff] %v368_v12 }
  0x61   : > { %433 = vst [vmem:[%s865_s25 + $0x150] sm:$0xff] %v369_v15 }
  0x62   : > { %434 = vst [vmem:[%s865_s25 + $0x158] sm:$0xff] %v370_v18 }
  0x63   : > { %435 = vst [vmem:[%s865_s25 + $0x160] sm:$0xff] %v371_v21 }
  0x64   : > { %436 = vst [vmem:[%s865_s25 + $0x168] sm:$0xff] %v372_v24 }
  0x65   : > { %437 = vst [vmem:[%s865_s25 + $0x170] sm:$0xff] %v373_v27 }
  0x66   : > { %438 = vst [vmem:[%s865_s25 + $0x178] sm:$0xff] %v374_v30 }
  0x67   : > { %439 = vst [vmem:[%s865_s25 + $0x180] sm:$0xff] %v375_v33 }
  0x68   : > { %440 = vst [vmem:[%s865_s25 + $0x188] sm:$0xff] %v376_v36 }
  0x69   : > { %441 = vst [vmem:[%s865_s25 + $0x190] sm:$0xff] %v377_v39 }
  0x6a   : > { %442 = vst [vmem:[%s865_s25 + $0x198] sm:$0xff] %v378_v42 }
  0x6b   : > { %443 = vst [vmem:[%s865_s25 + $0x1a0] sm:$0xff] %v379_v45 }
  0x6c   : > { %444 = vst [vmem:[%s865_s25 + $0x1a8] sm:$0xff] %v380_v48 }
  0x6d   : > { %445 = vst [vmem:[%s865_s25 + $0x1b0] sm:$0xff] %v381_v51 }
  0x6e   : > { %446 = vst [vmem:[%s865_s25 + $0x1b8] sm:$0xff] %v382_v54 }
  0x6f   : > { %447 = vst [vmem:[%s865_s25 + $0x1c0] sm:$0xff] %v383_v57 }
  0x70   : > { %448 = vst [vmem:[%s865_s25 + $0x1c8] sm:$0xff] %v384_v60 }
  0x71   : > { %449 = vst [vmem:[%s865_s25 + $0x1d0] sm:$0xff] %v385_v62 }
  0x72   : > { %450 = vst [vmem:[%s865_s25 + $0x1d8] sm:$0xff] %v386_v0 }
  0x73   : > { %451 = vst [vmem:[%s865_s25 + $0x1e0] sm:$0xff] %v387_v3 }
  0x74   : > { %452 = vst [vmem:[%s865_s25 + $0x1e8] sm:$0xff] %v388_v4 }
  0x75   : > { %453 = vst [vmem:[%s865_s25 + $0x1f0] sm:$0xff] %v389_v6 }
  0x76   : > { %454 = vst [vmem:[%s865_s25 + $0x1f8] sm:$0xff] %v390_v7 }
  0x77   : > { %667 = shalt.err (!%p664_p4)
}
  0x78   : > { %s710_s29 = smov 128   ;;  %s711_s30 = smov 8  }
  0x79   : > { %562 = dma.vmem_to_hbm [thread:$0]  (%p788_p11), %s469_s11, 8192, %s471_s12, %s456_s13, %s710_s29, %s710_s29, %s711_s30  }
  0x7a PF: > { %s485_s4 = sand.u32 1, %s694_s16   ;;  %p1143_p7 = scmp.ge.s32.totalorder %s706_s19, 2 }
  0x7b   : > { %s486_s5 = scalar_lea.sflag [#allocation6], %s485_s4 }
  0x7c   : > { %p569_p5 = pnand %p1143_p7, %p792_p12 }
  0x7e   : > { %p570_p8 = pneg %p569_p5 }
  0x80   : > { %689 = dma.done.wait (%p570_p8), %s486_s5, 8192  }
  0x81   : > { %691 = vsyncadd (%p570_p8), %s486_s5, 4294959104  ;;  %p18_p10 = scmp.ge.s32.totalorder %s763_s20, 4   ;;  %s1144_s16 = smov %s698_s17 }
  0x82   : > { %s1145_s17 = smov %s702_s18  ;;  %s1146_s18 = smov %s775_s23 }
  0x83   : > { %s1147_s19 = smov %s763_s20  ;;  %20 = sbr.rel (!%p18_p10) target bundleno = 8 (0x8), region = 77 }
  0x88   :  { %492 = vsyncpa [#allocation5], 1 }
  0x89   :  { %494 = vsyncpa [#allocation5 + $0x1], 1 }
  0x8a   :  { %495 = vsyncpa [#allocation6], 1 }
  0x8b   :  { %497 = vsyncpa [#allocation6 + $0x1], 1 }

</bundles_post_ra>
